<compile_context>
chip_gen: v7x
topology: tpu7x:2x2x1
jax: 0.10.0
libtpu: 0.0.40
codegen_flags: <defaults>
</compile_context>

<pallas_src>
import functools

import jax
import jax.numpy as jnp
from jax import lax
from jax.experimental import pallas as pl
from jax.experimental.pallas import tpu as pltpu


def _lrelu(x, slope=0.01):
    return jnp.where(x > 0, x, slope * x)


def self_attention_kernel(
    x_ref,                     # (N, d)    instances of the current bag
    xa_ref,                    # (1, d)    per-bag attention feature
    w_fe_ref, b_fe_ref,        # (2d, H_a), (1, H_a)   feature_extractor_part
    w_v_ref, b_v_ref,          # (H_a, D_a), (1, D_a)  attention_V
    w_u_ref, b_u_ref,          # (H_a, D_a), (1, D_a)  attention_U
    w_w_ref, b_w_ref,          # (1, D_a),  (1, 1)     attention_weights (PyTorch (out,in) layout)
    w_emb_ref, b_emb_ref,      # (H_a, 2d), (1, 2d)    att.embedding
    w_semb_ref, b_semb_ref,    # (2d, H_s), (1, H_s)   SelfAttentionBlock.embedding
    b_out_ref,                 # (1, H_s)  -> b
    a_out_ref,                 # (1, N)    -> A (lane-dense row)
    *, d,
):
    Xf = x_ref[...]            # (N, d)
    Xa = xa_ref[...]           # (1, d)

    # feature_extractor_part on hstack([X_fuse, tile(X_fuse_att)]) without
    # materializing the (N, 2d) concat: split W_fe along its input dimension.
    # The X_fuse_att contribution is computed once and broadcast over rows.
    w_fe_x = w_fe_ref[0:d, :]          # (d, H_a)
    w_fe_a = w_fe_ref[d:2 * d, :]      # (d, H_a)
    h_att = (jnp.dot(Xa, w_fe_a, preferred_element_type=jnp.float32)
             + b_fe_ref[...])                                           # (1, H_a)
    # Dropout(eval) = identity, then LeakyReLU
    H = _lrelu(jnp.dot(Xf, w_fe_x, preferred_element_type=jnp.float32)
               + h_att)                                                 # (N, H_a)

    # attention_V / attention_U (Dropout eval = identity)
    A_V = jnp.tanh(jnp.dot(H, w_v_ref[...], preferred_element_type=jnp.float32)
                   + b_v_ref[...])                                      # (N, D_a)
    A_U = _lrelu(jnp.dot(H, w_u_ref[...], preferred_element_type=jnp.float32)
                 + b_u_ref[...])                                        # (N, D_a)
    gate = A_V * A_U                                                    # (N, D_a)

    # attention_weights: (1, D_a) . (N, D_a)^T -> (1, N) score row.
    # Lane-dense output, no width-1 MXU pass, no (N,1)->(1,N) relayout.
    scores = _lrelu(
        lax.dot_general(w_w_ref[...], gate,
                        dimension_numbers=(((1,), (1,)), ((), ())),
                        preferred_element_type=jnp.float32)
        + b_w_ref[...])                                                 # (1, N)

    # softmax over instances (last axis -> lane reduction)
    m = jnp.max(scores, axis=-1, keepdims=True)
    e = jnp.exp(scores - m)
    A = e / jnp.sum(e, axis=-1, keepdims=True)                          # (1, N)
    a_out_ref[...] = A

    # M = A @ H : single MXU pass contracting over instances.
    M = jnp.dot(A, H, preferred_element_type=jnp.float32)               # (1, H_a)

    # att.embedding: Linear(H_a, 2d) + LeakyReLU
    M = _lrelu(jnp.dot(M, w_emb_ref[...], preferred_element_type=jnp.float32)
               + b_emb_ref[...])                                        # (1, 2d)

    # SelfAttentionBlock.embedding: Linear(2d, H_s) -> Dropout(eval) -> LeakyReLU
    b = _lrelu(jnp.dot(M, w_semb_ref[...], preferred_element_type=jnp.float32)
               + b_semb_ref[...])                                       # (1, H_s)
    b_out_ref[...] = b


def _resident_weight_spec(shape):
    # full-array block, constant index_map -> stays VMEM-resident across the grid
    return pl.BlockSpec(shape, lambda b: tuple(0 for _ in shape))


def self_attention_block_batched(X_fuse, X_fuse_att, params):
    """Batched over bags.

    X_fuse:     (B, N, d)
    X_fuse_att: (B, 1, d)
    Returns (b: (B, 1, H_s), A: (B, 1, N)).
    """
    B, N, d = X_fuse.shape
    (w_fe, b_fe, w_v, b_v, w_u, b_u, w_w, b_w,
     w_emb, b_emb, w_semb, b_semb) = params
    H_s = w_semb.shape[1]
    weights = (w_fe, b_fe, w_v, b_v, w_u, b_u, w_w, b_w,
               w_emb, b_emb, w_semb, b_semb)

    in_specs = [
        pl.BlockSpec((None, N, d), lambda b: (b, 0, 0)),   # X_fuse: per-bag block
        pl.BlockSpec((None, 1, d), lambda b: (b, 0, 0)),   # X_fuse_att: per-bag block
    ] + [_resident_weight_spec(w.shape) for w in weights]

    out_specs = (
        pl.BlockSpec((None, 1, H_s), lambda b: (b, 0, 0)),  # b
        pl.BlockSpec((None, 1, N), lambda b: (b, 0, 0)),    # A (lane-dense row)
    )

    kernel = functools.partial(self_attention_kernel, d=d)
    b_out, a_out = pl.pallas_call(
        kernel,
        grid=(B,),
        out_shape=(
            jax.ShapeDtypeStruct((B, 1, H_s), jnp.float32),
            jax.ShapeDtypeStruct((B, 1, N), jnp.float32),
        ),
        in_specs=in_specs,
        out_specs=out_specs,
        compiler_params=pltpu.CompilerParams(
            dimension_semantics=("parallel",)),   # bag axis shards across cores (v7x)
    )(X_fuse, X_fuse_att, *weights)
    return b_out, a_out


def self_attention_block(X_fuse, X_fuse_att, params):
    """Module-faithful forward: X_fuse (1, N, d), X_fuse_att (1, d).

    Returns (b: (1, H_s), A: (1, N)), matching the PyTorch SelfAttentionBlock.
    """
    # Treat the leading singleton dim of X_fuse as the bag axis (B = 1).
    b, A = self_attention_block_batched(X_fuse, X_fuse_att[None], params)
    return b[0], A[0]


def init_params(key, d, H_a, D_a, H_s):
    """Deterministic synthetic parameters.

    Linear weights stored as (in, out) (pre-transposed from PyTorch), except
    attention_weights which keeps PyTorch's natural (out=1, in=D_a) row layout.
    """
    d2 = 2 * d
    ks = jax.random.split(key, 12)
    s = 0.1
    w_fe   = s * jax.random.normal(ks[0],  (d2, H_a), jnp.float32)
    b_fe   = s * jax.random.normal(ks[1],  (1, H_a),  jnp.float32)
    w_v    = s * jax.random.normal(ks[2],  (H_a, D_a), jnp.float32)
    b_v    = s * jax.random.normal(ks[3],  (1, D_a),  jnp.float32)
    w_u    = s * jax.random.normal(ks[4],  (H_a, D_a), jnp.float32)
    b_u    = s * jax.random.normal(ks[5],  (1, D_a),  jnp.float32)
    w_w    = s * jax.random.normal(ks[6],  (1, D_a),  jnp.float32)
    b_w    = s * jax.random.normal(ks[7],  (1, 1),    jnp.float32)
    w_emb  = s * jax.random.normal(ks[8],  (H_a, d2), jnp.float32)
    b_emb  = s * jax.random.normal(ks[9],  (1, d2),   jnp.float32)
    w_semb = s * jax.random.normal(ks[10], (d2, H_s), jnp.float32)
    b_semb = s * jax.random.normal(ks[11], (1, H_s),  jnp.float32)
    return (w_fe, b_fe, w_v, b_v, w_u, b_u, w_w, b_w,
            w_emb, b_emb, w_semb, b_semb)


def reference_forward(X_fuse, X_fuse_att, params):
    """Pure-JAX reference mirroring the PyTorch forward (eval-mode dropout)."""
    (w_fe, b_fe, w_v, b_v, w_u, b_u, w_w, b_w,
     w_emb, b_emb, w_semb, b_semb) = params
    N = X_fuse.shape[1]
    Xa = jnp.tile(X_fuse_att, (N, 1))
    X = jnp.concatenate([X_fuse[0], Xa], axis=1)
    H = _lrelu(X @ w_fe + b_fe)
    A_V = jnp.tanh(H @ w_v + b_v)
    A_U = _lrelu(H @ w_u + b_u)
    A = _lrelu((A_V * A_U) @ w_w.T + b_w)          # (N, 1)
    A = jax.nn.softmax(A.T, axis=1)                # (1, N)
    M = A @ H                                      # (1, H_a)
    M = _lrelu(M @ w_emb + b_emb)                  # (1, 2d)
    b = _lrelu(M @ w_semb + b_semb)                # (1, H_s)
    return b, A


if __name__ == "__main__":
    # small shapes consistent with the module: N instances, feature dim d
    N, d = 8, 16
    H_a, D_a, H_s = 32, 16, 32
    B = 4

    key = jax.random.PRNGKey(0)
    k_x, k_a, k_p, k_xb, k_ab = jax.random.split(key, 5)
    X_fuse = jax.random.normal(k_x, (1, N, d), jnp.float32)
    X_fuse_att = jax.random.normal(k_a, (1, d), jnp.float32)
    params = init_params(k_p, d, H_a, D_a, H_s)

    # --- single-bag path (module-faithful interface) ---
    b_out, A_out = self_attention_block(X_fuse, X_fuse_att, params)
    jax.block_until_ready((b_out, A_out))
    b_ref, A_ref = reference_forward(X_fuse, X_fuse_att, params)
    assert b_out.shape == (1, H_s) and A_out.shape == (1, N)
    assert jnp.allclose(b_out, b_ref, atol=1e-5, rtol=1e-5)
    assert jnp.allclose(A_out, A_ref, atol=1e-5, rtol=1e-5)

    # --- batched path: B bags in one pallas_call, weights VMEM-resident ---
    Xb = jax.random.normal(k_xb, (B, N, d), jnp.float32)
    Xab = jax.random.normal(k_ab, (B, 1, d), jnp.float32)
    bb, Ab = self_attention_block_batched(Xb, Xab, params)
    jax.block_until_ready((bb, Ab))
    for i in range(B):
        b_r, A_r = reference_forward(Xb[i:i + 1], Xab[i], params)
        assert jnp.allclose(bb[i], b_r, atol=1e-5, rtol=1e-5)
        assert jnp.allclose(Ab[i], A_r, atol=1e-5, rtol=1e-5)

    print("KERNEL_OK")
</pallas_src>

<mosaic_0001>
module attributes {stable_mosaic.version = 11 : i64} {
  func.func @self_attention_kernel(%arg0: i32, %arg1: memref<1x8x16xf32, #tpu.memory_space<vmem>>, %arg2: memref<1x1x16xf32, #tpu.memory_space<vmem>>, %arg3: memref<32x32xf32, #tpu.memory_space<vmem>>, %arg4: memref<1x32xf32, #tpu.memory_space<vmem>>, %arg5: memref<32x16xf32, #tpu.memory_space<vmem>>, %arg6: memref<1x16xf32, #tpu.memory_space<vmem>>, %arg7: memref<32x16xf32, #tpu.memory_space<vmem>>, %arg8: memref<1x16xf32, #tpu.memory_space<vmem>>, %arg9: memref<1x16xf32, #tpu.memory_space<vmem>>, %arg10: memref<1x1xf32, #tpu.memory_space<vmem>>, %arg11: memref<32x32xf32, #tpu.memory_space<vmem>>, %arg12: memref<1x32xf32, #tpu.memory_space<vmem>>, %arg13: memref<32x32xf32, #tpu.memory_space<vmem>>, %arg14: memref<1x32xf32, #tpu.memory_space<vmem>>, %arg15: memref<1x1x32xf32, #tpu.memory_space<vmem>>, %arg16: memref<1x1x8xf32, #tpu.memory_space<vmem>>) attributes {dimension_semantics = [#tpu.dimension_semantics<parallel>], iteration_bounds = array<i64: 1>, scalar_prefetch = 0 : i64, scratch_operands = 0 : i64, tpu.core_type = #tpu.core_type<tc>, window_params = [{transform_indices = @transform_0, window_bounds = array<i64: 1, 8, 16>}, {transform_indices = @transform_1, window_bounds = array<i64: 1, 1, 16>}, {pipeline_mode = #tpu.pipeline_mode<synchronous>, transform_indices = @transform_2, window_bounds = array<i64: 32, 32>}, {pipeline_mode = #tpu.pipeline_mode<synchronous>, transform_indices = @transform_3, window_bounds = array<i64: 1, 32>}, {pipeline_mode = #tpu.pipeline_mode<synchronous>, transform_indices = @transform_4, window_bounds = array<i64: 32, 16>}, {pipeline_mode = #tpu.pipeline_mode<synchronous>, transform_indices = @transform_5, window_bounds = array<i64: 1, 16>}, {pipeline_mode = #tpu.pipeline_mode<synchronous>, transform_indices = @transform_6, window_bounds = array<i64: 32, 16>}, {pipeline_mode = #tpu.pipeline_mode<synchronous>, transform_indices = @transform_7, window_bounds = array<i64: 1, 16>}, {pipeline_mode = #tpu.pipeline_mode<synchronous>, transform_indices = @transform_8, window_bounds = array<i64: 1, 16>}, {pipeline_mode = #tpu.pipeline_mode<synchronous>, transform_indices = @transform_9, window_bounds = array<i64: 1, 1>}, {pipeline_mode = #tpu.pipeline_mode<synchronous>, transform_indices = @transform_10, window_bounds = array<i64: 32, 32>}, {pipeline_mode = #tpu.pipeline_mode<synchronous>, transform_indices = @transform_11, window_bounds = array<i64: 1, 32>}, {pipeline_mode = #tpu.pipeline_mode<synchronous>, transform_indices = @transform_12, window_bounds = array<i64: 32, 32>}, {pipeline_mode = #tpu.pipeline_mode<synchronous>, transform_indices = @transform_13, window_bounds = array<i64: 1, 32>}, {transform_indices = @transform_14, window_bounds = array<i64: 1, 1, 32>}, {transform_indices = @transform_15, window_bounds = array<i64: 1, 1, 8>}]} {
    %c0 = arith.constant 0 : index
    %c0_0 = arith.constant 0 : index
    %c0_1 = arith.constant 0 : index
    %0 = vector.load %arg1[%c0, %c0_0, %c0_1] : memref<1x8x16xf32, #tpu.memory_space<vmem>>, vector<1x8x16xf32>
    %1 = vector.shape_cast %0 : vector<1x8x16xf32> to vector<8x16xf32>
    %c0_2 = arith.constant 0 : index
    %c0_3 = arith.constant 0 : index
    %c0_4 = arith.constant 0 : index
    %2 = vector.load %arg2[%c0_2, %c0_3, %c0_4] : memref<1x1x16xf32, #tpu.memory_space<vmem>>, vector<1x1x16xf32>
    %3 = vector.shape_cast %2 : vector<1x1x16xf32> to vector<1x16xf32>
    %c0_5 = arith.constant 0 : index
    %c0_6 = arith.constant 0 : index
    %4 = vector.load %arg3[%c0_5, %c0_6] : memref<32x32xf32, #tpu.memory_space<vmem>>, vector<16x32xf32>
    %c16 = arith.constant 16 : index
    %c0_7 = arith.constant 0 : index
    %5 = vector.load %arg3[%c16, %c0_7] : memref<32x32xf32, #tpu.memory_space<vmem>>, vector<16x32xf32>
    %cst = arith.constant dense<0.000000e+00> : vector<1x32xf32>
    %6 = tpu.matmul %3, %5, %cst {dimension_numbers = #tpu.dot_dimension_numbers<[1], [0], [0], [1], [0, 0, 1, 1], [], []>} : vector<1x16xf32>, vector<16x32xf32>, vector<1x32xf32> -> vector<1x32xf32>
    %c0_8 = arith.constant 0 : index
    %c0_9 = arith.constant 0 : index
    %7 = vector.load %arg4[%c0_8, %c0_9] : memref<1x32xf32, #tpu.memory_space<vmem>>, vector<1x32xf32>
    %8 = arith.addf %6, %7 : vector<1x32xf32>
    %cst_10 = arith.constant dense<0.000000e+00> : vector<8x32xf32>
    %9 = tpu.matmul %1, %4, %cst_10 {dimension_numbers = #tpu.dot_dimension_numbers<[1], [0], [0], [1], [0, 0, 1, 1], [], []>} : vector<8x16xf32>, vector<16x32xf32>, vector<8x32xf32> -> vector<8x32xf32>
    %10 = vector.broadcast %8 : vector<1x32xf32> to vector<8x32xf32>
    %11 = arith.addf %9, %10 : vector<8x32xf32>
    %cst_11 = arith.constant 0.000000e+00 : f32
    %12 = vector.broadcast %cst_11 : f32 to vector<8x32xf32>
    %13 = arith.cmpf ogt, %11, %12 : vector<8x32xf32>
    %cst_12 = arith.constant 0.00999999977 : f32
    %14 = vector.broadcast %cst_12 : f32 to vector<8x32xf32>
    %15 = arith.mulf %14, %11 : vector<8x32xf32>
    %16 = arith.select %13, %11, %15 : vector<8x32xi1>, vector<8x32xf32>
    %c0_13 = arith.constant 0 : index
    %c0_14 = arith.constant 0 : index
    %17 = vector.load %arg5[%c0_13, %c0_14] : memref<32x16xf32, #tpu.memory_space<vmem>>, vector<32x16xf32>
    %cst_15 = arith.constant dense<0.000000e+00> : vector<8x16xf32>
    %18 = tpu.matmul %16, %17, %cst_15 {dimension_numbers = #tpu.dot_dimension_numbers<[1], [0], [0], [1], [0, 0, 1, 1], [], []>} : vector<8x32xf32>, vector<32x16xf32>, vector<8x16xf32> -> vector<8x16xf32>
    %c0_16 = arith.constant 0 : index
    %c0_17 = arith.constant 0 : index
    %19 = vector.load %arg6[%c0_16, %c0_17] : memref<1x16xf32, #tpu.memory_space<vmem>>, vector<1x16xf32>
    %20 = vector.broadcast %19 : vector<1x16xf32> to vector<8x16xf32>
    %21 = arith.addf %18, %20 : vector<8x16xf32>
    %22 = math.tanh %21 : vector<8x16xf32>
    %c0_18 = arith.constant 0 : index
    %c0_19 = arith.constant 0 : index
    %23 = vector.load %arg7[%c0_18, %c0_19] : memref<32x16xf32, #tpu.memory_space<vmem>>, vector<32x16xf32>
    %cst_20 = arith.constant dense<0.000000e+00> : vector<8x16xf32>
    %24 = tpu.matmul %16, %23, %cst_20 {dimension_numbers = #tpu.dot_dimension_numbers<[1], [0], [0], [1], [0, 0, 1, 1], [], []>} : vector<8x32xf32>, vector<32x16xf32>, vector<8x16xf32> -> vector<8x16xf32>
    %c0_21 = arith.constant 0 : index
    %c0_22 = arith.constant 0 : index
    %25 = vector.load %arg8[%c0_21, %c0_22] : memref<1x16xf32, #tpu.memory_space<vmem>>, vector<1x16xf32>
    %26 = vector.broadcast %25 : vector<1x16xf32> to vector<8x16xf32>
    %27 = arith.addf %24, %26 : vector<8x16xf32>
    %cst_23 = arith.constant 0.000000e+00 : f32
    %28 = vector.broadcast %cst_23 : f32 to vector<8x16xf32>
    %29 = arith.cmpf ogt, %27, %28 : vector<8x16xf32>
    %cst_24 = arith.constant 0.00999999977 : f32
    %30 = vector.broadcast %cst_24 : f32 to vector<8x16xf32>
    %31 = arith.mulf %30, %27 : vector<8x16xf32>
    %32 = arith.select %29, %27, %31 : vector<8x16xi1>, vector<8x16xf32>
    %33 = arith.mulf %22, %32 : vector<8x16xf32>
    %c0_25 = arith.constant 0 : index
    %c0_26 = arith.constant 0 : index
    %34 = vector.load %arg9[%c0_25, %c0_26] : memref<1x16xf32, #tpu.memory_space<vmem>>, vector<1x16xf32>
    %cst_27 = arith.constant dense<0.000000e+00> : vector<1x8xf32>
    %35 = tpu.matmul %34, %33, %cst_27 {dimension_numbers = #tpu.dot_dimension_numbers<[1], [1], [0], [0], [0, 0, 1, 0], [], []>} : vector<1x16xf32>, vector<8x16xf32>, vector<1x8xf32> -> vector<1x8xf32>
    %c0_28 = arith.constant 0 : index
    %c0_29 = arith.constant 0 : index
    %36 = vector.load %arg10[%c0_28, %c0_29] : memref<1x1xf32, #tpu.memory_space<vmem>>, vector<1x1xf32>
    %37 = vector.broadcast %36 : vector<1x1xf32> to vector<1x8xf32>
    %38 = arith.addf %35, %37 : vector<1x8xf32>
    %cst_30 = arith.constant 0.000000e+00 : f32
    %39 = vector.broadcast %cst_30 : f32 to vector<1x8xf32>
    %40 = arith.cmpf ogt, %38, %39 : vector<1x8xf32>
    %cst_31 = arith.constant 0.00999999977 : f32
    %41 = vector.broadcast %cst_31 : f32 to vector<1x8xf32>
    %42 = arith.mulf %41, %38 : vector<1x8xf32>
    %43 = arith.select %40, %38, %42 : vector<1x8xi1>, vector<1x8xf32>
    %cst_32 = arith.constant dense<0xFF800000> : vector<1xf32>
    %44 = vector.multi_reduction <maximumf>, %43, %cst_32 [1] : vector<1x8xf32> to vector<1xf32>
    %45 = vector.shape_cast %44 : vector<1xf32> to vector<1x1xf32>
    %46 = vector.broadcast %45 : vector<1x1xf32> to vector<1x8xf32>
    %47 = arith.subf %43, %46 : vector<1x8xf32>
    %48 = math.exp %47 : vector<1x8xf32>
    %cst_33 = arith.constant dense<0.000000e+00> : vector<1xf32>
    %49 = vector.multi_reduction <add>, %48, %cst_33 [1] : vector<1x8xf32> to vector<1xf32>
    %50 = vector.shape_cast %49 : vector<1xf32> to vector<1x1xf32>
    %51 = vector.broadcast %50 : vector<1x1xf32> to vector<1x8xf32>
    %52 = arith.divf %48, %51 : vector<1x8xf32>
    %c0_34 = arith.constant 0 : index
    %c0_35 = arith.constant 0 : index
    %c0_36 = arith.constant 0 : index
    %53 = vector.load %arg16[%c0_34, %c0_35, %c0_36] : memref<1x1x8xf32, #tpu.memory_space<vmem>>, vector<1x1x8xf32>
    %54 = vector.shape_cast %53 : vector<1x1x8xf32> to vector<1x8xf32>
    %55 = vector.shape_cast %52 : vector<1x8xf32> to vector<1x1x8xf32>
    tpu.vector_store %arg16[%c0_34, %c0_35, %c0_36], %55 {strides = array<i32>} : memref<1x1x8xf32, #tpu.memory_space<vmem>>, vector<1x1x8xf32>,
    %cst_37 = arith.constant dense<0.000000e+00> : vector<1x32xf32>
    %56 = tpu.matmul %52, %16, %cst_37 {dimension_numbers = #tpu.dot_dimension_numbers<[1], [0], [0], [1], [0, 0, 1, 1], [], []>} : vector<1x8xf32>, vector<8x32xf32>, vector<1x32xf32> -> vector<1x32xf32>
    %c0_38 = arith.constant 0 : index
    %c0_39 = arith.constant 0 : index
    %57 = vector.load %arg11[%c0_38, %c0_39] : memref<32x32xf32, #tpu.memory_space<vmem>>, vector<32x32xf32>
    %cst_40 = arith.constant dense<0.000000e+00> : vector<1x32xf32>
    %58 = tpu.matmul %56, %57, %cst_40 {dimension_numbers = #tpu.dot_dimension_numbers<[1], [0], [0], [1], [0, 0, 1, 1], [], []>} : vector<1x32xf32>, vector<32x32xf32>, vector<1x32xf32> -> vector<1x32xf32>
    %c0_41 = arith.constant 0 : index
    %c0_42 = arith.constant 0 : index
    %59 = vector.load %arg12[%c0_41, %c0_42] : memref<1x32xf32, #tpu.memory_space<vmem>>, vector<1x32xf32>
    %60 = arith.addf %58, %59 : vector<1x32xf32>
    %cst_43 = arith.constant 0.000000e+00 : f32
    %61 = vector.broadcast %cst_43 : f32 to vector<1x32xf32>
    %62 = arith.cmpf ogt, %60, %61 : vector<1x32xf32>
    %cst_44 = arith.constant 0.00999999977 : f32
    %63 = vector.broadcast %cst_44 : f32 to vector<1x32xf32>
    %64 = arith.mulf %63, %60 : vector<1x32xf32>
    %65 = arith.select %62, %60, %64 : vector<1x32xi1>, vector<1x32xf32>
    %c0_45 = arith.constant 0 : index
    %c0_46 = arith.constant 0 : index
    %66 = vector.load %arg13[%c0_45, %c0_46] : memref<32x32xf32, #tpu.memory_space<vmem>>, vector<32x32xf32>
    %cst_47 = arith.constant dense<0.000000e+00> : vector<1x32xf32>
    %67 = tpu.matmul %65, %66, %cst_47 {dimension_numbers = #tpu.dot_dimension_numbers<[1], [0], [0], [1], [0, 0, 1, 1], [], []>} : vector<1x32xf32>, vector<32x32xf32>, vector<1x32xf32> -> vector<1x32xf32>
    %c0_48 = arith.constant 0 : index
    %c0_49 = arith.constant 0 : index
    %68 = vector.load %arg14[%c0_48, %c0_49] : memref<1x32xf32, #tpu.memory_space<vmem>>, vector<1x32xf32>
    %69 = arith.addf %67, %68 : vector<1x32xf32>
    %cst_50 = arith.constant 0.000000e+00 : f32
    %70 = vector.broadcast %cst_50 : f32 to vector<1x32xf32>
    %71 = arith.cmpf ogt, %69, %70 : vector<1x32xf32>
    %cst_51 = arith.constant 0.00999999977 : f32
    %72 = vector.broadcast %cst_51 : f32 to vector<1x32xf32>
    %73 = arith.mulf %72, %69 : vector<1x32xf32>
    %74 = arith.select %71, %69, %73 : vector<1x32xi1>, vector<1x32xf32>
    %c0_52 = arith.constant 0 : index
    %c0_53 = arith.constant 0 : index
    %c0_54 = arith.constant 0 : index
    %75 = vector.load %arg15[%c0_52, %c0_53, %c0_54] : memref<1x1x32xf32, #tpu.memory_space<vmem>>, vector<1x1x32xf32>
    %76 = vector.shape_cast %75 : vector<1x1x32xf32> to vector<1x32xf32>
    %77 = vector.shape_cast %74 : vector<1x32xf32> to vector<1x1x32xf32>
    tpu.vector_store %arg15[%c0_52, %c0_53, %c0_54], %77 {strides = array<i32>} : memref<1x1x32xf32, #tpu.memory_space<vmem>>, vector<1x1x32xf32>,
    return
  }
  func.func @transform_0(%arg0: i32) -> (i32, i32, i32) {
    %c0_i32 = arith.constant 0 : i32
    %c0_i32_0 = arith.constant 0 : i32
    %c0_i32_1 = arith.constant 0 : i32
    return %arg0, %c0_i32, %c0_i32_0 : i32, i32, i32
  }
  func.func @transform_1(%arg0: i32) -> (i32, i32, i32) {
    %c0_i32 = arith.constant 0 : i32
    %c0_i32_0 = arith.constant 0 : i32
    %c0_i32_1 = arith.constant 0 : i32
    return %arg0, %c0_i32, %c0_i32_0 : i32, i32, i32
  }
  func.func @transform_2(%arg0: i32) -> (i32, i32) {
    %c0_i32 = arith.constant 0 : i32
    %c0_i32_0 = arith.constant 0 : i32
    %c0_i32_1 = arith.constant 0 : i32
    return %c0_i32, %c0_i32_0 : i32, i32
  }
  func.func @transform_3(%arg0: i32) -> (i32, i32) {
    %c0_i32 = arith.constant 0 : i32
    %c0_i32_0 = arith.constant 0 : i32
    %c0_i32_1 = arith.constant 0 : i32
    return %c0_i32, %c0_i32_0 : i32, i32
  }
  func.func @transform_4(%arg0: i32) -> (i32, i32) {
    %c0_i32 = arith.constant 0 : i32
    %c0_i32_0 = arith.constant 0 : i32
    %c0_i32_1 = arith.constant 0 : i32
    return %c0_i32, %c0_i32_0 : i32, i32
  }
  func.func @transform_5(%arg0: i32) -> (i32, i32) {
    %c0_i32 = arith.constant 0 : i32
    %c0_i32_0 = arith.constant 0 : i32
    %c0_i32_1 = arith.constant 0 : i32
    return %c0_i32, %c0_i32_0 : i32, i32
  }
  func.func @transform_6(%arg0: i32) -> (i32, i32) {
    %c0_i32 = arith.constant 0 : i32
    %c0_i32_0 = arith.constant 0 : i32
    %c0_i32_1 = arith.constant 0 : i32
    return %c0_i32, %c0_i32_0 : i32, i32
  }
  func.func @transform_7(%arg0: i32) -> (i32, i32) {
    %c0_i32 = arith.constant 0 : i32
    %c0_i32_0 = arith.constant 0 : i32
    %c0_i32_1 = arith.constant 0 : i32
    return %c0_i32, %c0_i32_0 : i32, i32
  }
  func.func @transform_8(%arg0: i32) -> (i32, i32) {
    %c0_i32 = arith.constant 0 : i32
    %c0_i32_0 = arith.constant 0 : i32
    %c0_i32_1 = arith.constant 0 : i32
    return %c0_i32, %c0_i32_0 : i32, i32
  }
  func.func @transform_9(%arg0: i32) -> (i32, i32) {
    %c0_i32 = arith.constant 0 : i32
    %c0_i32_0 = arith.constant 0 : i32
    %c0_i32_1 = arith.constant 0 : i32
    return %c0_i32, %c0_i32_0 : i32, i32
  }
  func.func @transform_10(%arg0: i32) -> (i32, i32) {
    %c0_i32 = arith.constant 0 : i32
    %c0_i32_0 = arith.constant 0 : i32
    %c0_i32_1 = arith.constant 0 : i32
    return %c0_i32, %c0_i32_0 : i32, i32
  }
  func.func @transform_11(%arg0: i32) -> (i32, i32) {
    %c0_i32 = arith.constant 0 : i32
    %c0_i32_0 = arith.constant 0 : i32
    %c0_i32_1 = arith.constant 0 : i32
    return %c0_i32, %c0_i32_0 : i32, i32
  }
  func.func @transform_12(%arg0: i32) -> (i32, i32) {
    %c0_i32 = arith.constant 0 : i32
    %c0_i32_0 = arith.constant 0 : i32
    %c0_i32_1 = arith.constant 0 : i32
    return %c0_i32, %c0_i32_0 : i32, i32
  }
  func.func @transform_13(%arg0: i32) -> (i32, i32) {
    %c0_i32 = arith.constant 0 : i32
    %c0_i32_0 = arith.constant 0 : i32
    %c0_i32_1 = arith.constant 0 : i32
    return %c0_i32, %c0_i32_0 : i32, i32
  }
  func.func @transform_14(%arg0: i32) -> (i32, i32, i32) {
    %c0_i32 = arith.constant 0 : i32
    %c0_i32_0 = arith.constant 0 : i32
    %c0_i32_1 = arith.constant 0 : i32
    return %arg0, %c0_i32, %c0_i32_0 : i32, i32, i32
  }
  func.func @transform_15(%arg0: i32) -> (i32, i32, i32) {
    %c0_i32 = arith.constant 0 : i32
    %c0_i32_0 = arith.constant 0 : i32
    %c0_i32_1 = arith.constant 0 : i32
    return %arg0, %c0_i32, %c0_i32_0 : i32, i32, i32
  }
}

</mosaic_0001>

<bundles_post_ra>
// kernel: tpu_custom_call.1
= control target key start
LH: loop header
LB: loop body
LE: loop exit
PB: predicated region body
PF: predicated region fallthrough
CT: control target
= control target key end

     0   :  { %s1238_s0 = inlined_call_operand.hbm [shape: f32[1,8,16], index: 0, kind: input, shape index: {}]   ;;  %s1239_s1 = inlined_call_operand.vmem [shape: f32[1,1,16], index: 1, kind: input, shape index: {}]   ;;  %s1240_s2 = inlined_call_operand.vmem [shape: f32[32,32], index: 2, kind: input, shape index: {}]   ;;  %s1241_s3 = inlined_call_operand.vmem [shape: f32[1,32], index: 3, kind: input, shape index: {}]   ;;  %s1242_s4 = inlined_call_operand.vmem [shape: f32[32,16], index: 4, kind: input, shape index: {}]   ;;  %s1243_s5 = inlined_call_operand.vmem [shape: f32[1,16], index: 5, kind: input, shape index: {}]   ;;  %s1244_s6 = inlined_call_operand.vmem [shape: f32[32,16], index: 6, kind: input, shape index: {}]   ;;  %s1245_s7 = inlined_call_operand.vmem [shape: f32[1,16], index: 7, kind: input, shape index: {}]   ;;  %s1246_s8 = inlined_call_operand.vmem [shape: f32[1,16], index: 8, kind: input, shape index: {}]   ;;  %s1247_s9 = inlined_call_operand.<no memory space> [shape: f32[1,1], index: 9, kind: input, shape index: {}]   ;;  %s1248_s10 = inlined_call_operand.vmem [shape: f32[32,32], index: 10, kind: input, shape index: {}]   ;;  %s1249_s11 = inlined_call_operand.vmem [shape: f32[1,32], index: 11, kind: input, shape index: {}]   ;;  %s1250_s12 = inlined_call_operand.vmem [shape: f32[32,32], index: 12, kind: input, shape index: {}]   ;;  %s1251_s13 = inlined_call_operand.vmem [shape: f32[1,32], index: 13, kind: input, shape index: {}]   ;;  %s1252_s14 = inlined_call_operand.hbm [shape: f32[1,1,32], index: 14, kind: output, shape index: {0}]   ;;  %s1253_s15 = inlined_call_operand.hbm [shape: f32[1,1,8], index: 15, kind: output, shape index: {1}]  }
   0x1   :  { %v21_v0 = vstv %s1247_s9 }
   0x2   :  { %22 = vst [vmem:[#allocation2] sm:$0x1] %v21_v0 }
   0x3   :  { %23 = vsyncpa [#allocation4], 0 }
   0x4   :  { %24 = vsyncpa [#allocation5], 0 }
   0x5   :  { %25 = vsyncpa [#allocation8], 0  ;;  %s992_s20 = smov [#allocation3]   ;;  %s920_s24 = scalar_lea.hbm %s1238_s0, 128 }
   0x6   :  { %s32_s21 = sshll.u32 %s992_s20, 4  ;;  %p921_p0 = scmp.ne.s32.totalorder %s1238_s0, %s920_s24  ;;  %s33_s21 = int_to_ptr.vmem [resolvable:$true] %s32_s21 }
   0x7   :  { %p924_p1 = scmp.lt.u32.totalorder %s920_s24, %s1238_s0 }
   0x9   :  { %p926_p2 = pnand %p924_p1, %p921_p0 }
   0xb   :  { %929 = shalt.err (!%p926_p2)
}
   0xc   :  { %s930_s9 = scalar_lea.vmem %s33_s21, 128  ;;  %p935_p4 = scmp.lt.s32.totalorder %s33_s21, %s33_s21 }
   0xd   :  { %p931_p3 = scmp.ne.s32.totalorder %s33_s21, %s930_s9  ;;  %p936_p5 = scmp.lt.s32.totalorder %s930_s9, %s930_s9 }
   0xf   :  { %p937_p6 = por %p936_p5, %p935_p4 }
  0x11   :  { %p938_p7 = pnand %p937_p6, %p931_p3 }
  0x13   :  { %941 = shalt.err (!%p938_p7)
}
  0x14   :  { %35 = dma.hbm_to_vmem [thread:$0]  %s1238_s0, 128, %s33_s21, [#allocation4]  }
  0x15   :  { %986 = dma.done.wait [#allocation4], 128  }
  0x16   :  { %987 = vsyncadd [#allocation4], 4294967168  ;;  %v993_v1 = vmov 0.0|0.0   ;;  %vm994_vm0 = vmmov 0   ;;  %v995_v2 = vmov 0.0   ;;  %v69_v3 = vld [vmem:[%s1240_s2 + $0x10] sm:$0xff]  ;;  %v146_v23 = vlaneseq }
  0x17   :  { %876 = vmatprep.subr.bf16.mxu0 %v993_v1  ;;  %812 = vmatprep.mubr.msk.f32.mxu0 %vm994_vm0, %v995_v2  ;;  %v70_v4 = vld [vmem:[%s1240_s2 + $0x18] sm:$0xff]  ;;  %v67_v6 = vld [vmem:[%s1240_s2] sm:$0xff]  ;;  %v68_v7 = vld [vmem:[%s1240_s2 + $0x8] sm:$0xff]  ;;  %vm72_vm1 = vcmask 130048   ;;  %vm237_vm3 = vcmask 261120   ;;  %v996_v37 = vmov 0  }
  0x18   :  { %879 = vmatprep.subr.bf16.mxu1 %v993_v1  ;;  %819 = vmatprep.mubr.msk.f32.mxu1 %vm994_vm0, %v995_v2  ;;  %v877_v5 = vpack.c.bf16 %v70_v4, %v69_v3  ;;  %v880_v8 = vpack.c.bf16 %v68_v7, %v67_v6  ;;  %v66_v9 = vld [vmem:[%s1239_s1] sm:$0x1]  ;;  %v65_v10 = vld [vmem:[#allocation3] sm:$0xff]  ;;  %v314_v17 = vld [vmem:[%s1244_s6 + $0x10] sm:$0xff]  ;;  %v147_v24 = vshrl.u32 %v146_v23, 7  ;;  %vm487_vm6 = vcmask 57344  }
  0x19   :  { %v312_v11 = vld [vmem:[%s1244_s6] sm:$0xff]  ;;  %v313_v12 = vld [vmem:[%s1244_s6 + $0x8] sm:$0xff]  ;;  %v315_v18 = vld [vmem:[%s1244_s6 + $0x18] sm:$0xff]  ;;  %913 = vset.pattern.permute.xlu0 %v996_v37  ;;  %vm500_vm7 = vcmask 64512   ;;  %s997_s6 = smov [#allocation7]  }
  0x1a   :  { %878 = vmatpush3.bf16.msra.mxu0 %v877_v5  ;;  %881 = vmatpush3.bf16.msra.mxu1 %v880_v8  ;;  %v889_v13 = vpack.c.bf16 %v313_v12, %v312_v11  ;;  %v226_v14 = vld [vmem:[%s1242_s4] sm:$0xff]  ;;  %v227_v15 = vld [vmem:[%s1242_s4 + $0x8] sm:$0xff]  ;;  %v892_v19 = vpack.c.bf16 %v315_v18, %v314_v17  ;;  %v228_v20 = vld [vmem:[%s1242_s4 + $0x10] sm:$0xff]  ;;  %v148_v26 = vsub.s32 0, %v147_v24  ;;  %s754_s22 = sshll.u32 %s997_s6, 4  ;;  %s755_s22 = int_to_ptr.vmem [resolvable:$true] %s754_s22 }
  0x1b   :  { %882 = vmatprep.subr.bf16.mxu0 %v993_v1  ;;  %888 = vmatprep.subr.bf16.mxu1 %v993_v1  ;;  %v883_v16 = vpack.c.bf16 %v227_v15, %v226_v14  ;;  %v229_v21 = vld [vmem:[%s1242_s4 + $0x18] sm:$0xff]  ;;  %v71_v25 = vld [vmem:[%s1241_s3] sm:$0x1]  ;;  %v575_v3 = vld [vmem:[%s1248_s10 + $0x8] sm:$0xff]  ;;  %s942_s3 = scalar_lea.vmem %s755_s22, 16  ;;  %p947_p9 = scmp.lt.s32.totalorder %s755_s22, %s755_s22 }
  0x1c   :  { %v886_v22 = vpack.c.bf16 %v229_v21, %v228_v20  ;;  %v398_v36 = vld [vmem:[#allocation2] sm:$0x1]  ;;  %v576_v4 = vld [vmem:[%s1248_s10 + $0x10] sm:$0xff]  ;;  %v577_v6 = vld [vmem:[%s1248_s10 + $0x18] sm:$0xff]  ;;  %p943_p8 = scmp.ne.s32.totalorder %s755_s22, %s942_s3 }
  0x1d   :  { %813 = vmatmul.mubr.msk.f32.vlgmr.msra.gmra.mrb[0].mxu0 %vm72_vm1, %v66_v9  ;;  %820 = vmatmul.mubr.msk.f32.vlgmr.msra.gmra.mrb[0].mxu1 %vm72_vm1, %v65_v10  ;;  %v769_v38 = vld [vmem:[%s1243_s5] ss:$0 sm:$0xff]  ;;  %v898_v7 = vpack.c.bf16 %v577_v6, %v576_v4  ;;  %v656_v12 = vld [vmem:[%s1250_s12 + $0x8] sm:$0xff] }
  0x1e   :  { %830 = vmatprep.mubr.msk.f32.mxu0 %vm994_vm0, %v995_v2  ;;  %841 = vmatprep.mubr.msk.f32.mxu1 %vm994_vm0, %v995_v2  ;;  %v771_v44 = vld [vmem:[%s1245_s7] ss:$0 sm:$0xff] }
  0x1f   :  { %890 = vmatpush3.bf16.msra.mxu1 %v889_v13  ;;  %884 = vmatpush3.bf16.msra.mxu0 %v883_v16  ;;  %v397_v50 = vld [vmem:[%s1246_s8] sm:$0x1]  ;;  %v658_v16 = vld [vmem:[%s1250_s12 + $0x18] sm:$0xff] }
  0x20   :  { %891 = vmatprep.subr.bf16.mxu1 %v993_v1  ;;  %885 = vmatprep.subr.bf16.mxu0 %v993_v1  ;;  %v574_v0 = vld [vmem:[%s1248_s10] sm:$0xff] }
  0x21   :  { %401 = vperm.xlu0 %913, %v398_v36   ;;  %v895_v5 = vpack.c.bf16 %v575_v3, %v574_v0  ;;  %v655_v11 = vld [vmem:[%s1250_s12] sm:$0xff] }
  0x22   :  { %v901_v13 = vpack.c.bf16 %v656_v12, %v655_v11  ;;  %v578_v18 = vld [vmem:[%s1249_s11] sm:$0x1] }
  0x23   :  { %893 = vmatpush3.bf16.msra.mxu1 %v892_v19  ;;  %887 = vmatpush3.bf16.msra.mxu0 %v886_v22 }
  0x24   :  { %849 = vmatprep.subr.mxu1 %v995_v2  ;;  %844 = vmatprep.subr.mxu0 %v995_v2 }
  0xa0   :  { %v402_v51 = vpop.permute.xlu0 %401 }
  0xa1   :  { %v407_v52 = vrot.slane %v402_v51, %v148_v26 }
  0xf0   :  { %v142_v27 = vpop.f32.mrb[0].mxu0  ;;  %v219_v30 = vpop.f32.mrb[0].mxu1 }
  0xf1   :  { %v143_v28 = vadd.f32 %v142_v27, %v71_v25  ;;  %v814_v29 = vpop.f32.mrb[1].mxu0  ;;  %v821_v31 = vpop.f32.mrb[1].mxu1 }
  0xf3   :  { %v149_v32 = vrot.slane %v143_v28, %v148_v26 }
  0xf5   :  { %v220_v33 = vadd.f32 %v219_v30, %v149_v32 }
  0xf7   :  { %vm223_vm2 = vcmp.gt.f32.partialorder %v220_v33, 0.0  ;;  %v224_v34 = vmul.f32 0.01, %v220_v33 }
  0xf9   :  { %v225_v35 = vsel %vm223_vm2, %v220_v33, %v224_v34 }
  0xfa   :  { %831 = vmatmul.mubr.msk.f32.vlgmr.msra.gmra.mrb[2].mxu0 %vm237_vm3, %v225_v35  ;;  %842 = vmatmul.mubr.msk.f32.vlgmr.msra.gmra.mrb[2].mxu1 %vm237_vm3, %v225_v35 }
  0xfb   :  { %850 = vmatpush3.msra.mxu1 %v225_v35  ;;  %846 = vmatprep.mubr.msk.f32.mxu0 %vm994_vm0, %v995_v2 }
  0xfc   :  { %851 = vmatprep.mubr.msk.f32.mxu1 %vm994_vm0, %v995_v2  ;;  %900 = vmatprep.subr.bf16.mxu1 %v993_v1 }
 0x1cd   :  { %v307_v39 = vpop.f32.mrb[2].mxu0  ;;  %v389_v40 = vpop.f32.mrb[2].mxu1 }
 0x1ce   :  { %v308_v41 = vadd.f32 %v769_v38, %v307_v39  ;;  %v832_v42 = vpop.f32.mrb[3].mxu0  ;;  %v843_v43 = vpop.f32.mrb[3].mxu1  ;;  %v390_v45 = vadd.f32 %v771_v44, %v389_v40 }
 0x1d0   :  { %914 = vtanh.f32 %v308_v41  ;;  %v394_v46 = vmul.f32 0.01, %v390_v45  ;;  %vm393_vm4 = vcmp.gt.f32.partialorder %v390_v45, 0.0 }
 0x1d2   :  { %v395_v48 = vsel %vm393_vm4, %v390_v45, %v394_v46 }
 0x1da   :  { %v915_v47 = vpop.eup %914 }
 0x1db   :  { %v396_v49 = vmul.f32 %v915_v47, %v395_v48 }
 0x1dd   :  { %845 = vmatpush3.xpose.msk.msra.mxu0 %vm72_vm1, %v396_v49 }
 0x1de   :  { %894 = vmatprep.subr.bf16.mxu0 %v993_v1 }
 0x1e0   :  { %847 = vmatmul.mubr.msk.f32.vlgmr.msra.gmra.mrb[4].mxu0 %vm72_vm1, %v397_v50 }
 0x1e1   :  { %862 = vmatprep.mubr.msk.f32.mxu0 %vm994_vm0, %v995_v2  ;;  %896 = vmatpush3.bf16.msra.mxu0 %v895_v5 }
 0x1e2   :  { %897 = vmatprep.subr.bf16.mxu0 %v993_v1 }
 0x1e5   :  { %899 = vmatpush3.bf16.msra.mxu0 %v898_v7 }
 0x2b3   :  { %v480_v53 = vpop.f32.mrb[4].mxu0 }
 0x2b4   :  { %v481_v54 = vadd.f32 %v480_v53, %v407_v52  ;;  %v848_v55 = vpop.f32.mrb[5].mxu0 }
 0x2b6   :  { %v485_v56 = vmul.f32 0.01, %v481_v54  ;;  %vm484_vm5 = vcmp.gt.f32.partialorder %v481_v54, 0.0 }
 0x2b8   :  { %v486_v57 = vsel %vm484_vm5, %v481_v54, %v485_v56 }
 0x2b9   :  { %v488_v58 = vsel %vm487_vm6, %v486_v57, -inf }
 0x2ba   :  { %489 = vmax.xlane.f32.xlu0 %v488_v58 }
 0x347   :  { %v490_v59 = vpop.xlane.xlu0 %489 }
 0x348   :  { %v491_v60 = vsub.f32 %v486_v57, %v490_v59 }
 0x34a   :  { %v492_v61 = vmul.f32 1.442695, %v491_v60 }
 0x34c   :  { %916 = vpow2.f32 %v492_v61 }
 0x356   :  { %v917_v62 = vpop.eup %916 }
 0x357   :  { %v494_v63 = vsel %vm487_vm6, %v917_v62, 0.0 }
 0x358   :  { %495 = vadd.xlane.f32.xlu1 %v494_v63 }
 0x3e5   :  { %v496_v8 = vpop.xlane.xlu1 %495 }
 0x3e6   :  { %918 = vrcp.f32 %v496_v8 }
 0x3f0   :  { %v919_v9 = vpop.eup %918 }
 0x3f1   :  { %v498_v10 = vmul.f32 %v919_v9, %v917_v62 }
 0x3f3   :  { %499 = vst.msk [vmem:[#allocation7] sm:$0x1] %vm487_vm6, %v498_v10  ;;  %852 = vmatmul.mubr.msk.f32.vlgmr.msra.gmra.mrb[4].mxu1 %vm500_vm7, %v498_v10 }
 0x3f4   :  { %873 = vmatprep.mubr.msk.f32.mxu1 %vm994_vm0, %v995_v2  ;;  %902 = vmatpush3.bf16.msra.mxu1 %v901_v13  ;;  %v657_v2 = vld [vmem:[%s1250_s12 + $0x10] sm:$0xff]  ;;  %s946_s12 = scalar_lea.vmem %s755_s22, 32 }
 0x3f5   :  { %903 = vmatprep.subr.bf16.mxu1 %v993_v1  ;;  %v904_v17 = vpack.c.bf16 %v658_v16, %v657_v2  ;;  %p948_p10 = scmp.lt.s32.totalorder %s946_s12, %s942_s3 }
 0x3f7   :  { %p949_p11 = por %p948_p10, %p947_p9 }
 0x3f8   :  { %905 = vmatpush3.bf16.msra.mxu1 %v904_v17 }
 0x3f9   :  { %p950_p12 = pnand %p949_p11, %p943_p8 }
 0x4c6   :  { %v570_v14 = vpop.f32.mrb[4].mxu1 }
 0x4c7   :  { %v853_v15 = vpop.f32.mrb[5].mxu1  ;;  %863 = vmatmul.mubr.msk.f32.vlgmr.msra.gmra.mrb[6].mxu0 %vm237_vm3, %v570_v14 }
 0x59a   :  { %v648_v19 = vpop.f32.mrb[6].mxu0 }
 0x59b   :  { %v649_v1 = vadd.f32 %v648_v19, %v578_v18  ;;  %v864_v20 = vpop.f32.mrb[7].mxu0 }
 0x59d   :  { %vm652_vm8 = vcmp.gt.f32.partialorder %v649_v1, 0.0  ;;  %v653_v21 = vmul.f32 0.01, %v649_v1 }
 0x59f   :  { %v654_v22 = vsel %vm652_vm8, %v649_v1, %v653_v21 }
 0x5a0   :  { %874 = vmatmul.mubr.msk.f32.vlgmr.msra.gmra.mrb[6].mxu1 %vm237_vm3, %v654_v22 }
 0x5a1   :  { %953 = shalt.err (!%p950_p12)
}
 0x5a2   :  { %s954_s23 = scalar_lea.hbm %s1253_s15, 16 }
 0x5a3   :  { %p955_p13 = scmp.ne.s32.totalorder %s1253_s15, %s954_s23  ;;  %p958_p0 = scmp.lt.u32.totalorder %s954_s23, %s1253_s15 }
 0x5a5   :  { %p960_p1 = pnand %p958_p0, %p955_p13 }
 0x5a7   :  { %963 = shalt.err (!%p960_p1)
}
 0x5a8   :  { %757 = dma.vmem_to_hbm [thread:$0]  %s755_s22, 16, %s1253_s15, [#allocation8]   ;;  %v659_v23 = vld [vmem:[%s1251_s13] sm:$0x1]  ;;  %vm736_vm10 = vcmask 253952  }
 0x5a9   :  { %s998_s27 = smov [#allocation6]  }
 0x5aa   :  { %s744_s28 = sshll.u32 %s998_s27, 4  ;;  %s745_s28 = int_to_ptr.vmem [resolvable:$true] %s744_s28 }
 0x5ab   :  { %s964_s9 = scalar_lea.vmem %s745_s28, 16  ;;  %s968_s29 = scalar_lea.vmem %s745_s28, 32 }
 0x5ac   :  { %p965_p2 = scmp.ne.s32.totalorder %s745_s28, %s964_s9  ;;  %p969_p3 = scmp.lt.s32.totalorder %s745_s28, %s745_s28 }
 0x5ad   :  { %p970_p4 = scmp.lt.s32.totalorder %s968_s29, %s964_s9 }
 0x5af   :  { %p971_p5 = por %p970_p4, %p969_p3 }
 0x5b1   :  { %p972_p6 = pnand %p971_p5, %p965_p2 }
 0x673   :  { %v729_v24 = vpop.f32.mrb[6].mxu1 }
 0x674   :  { %v730_v25 = vadd.f32 %v729_v24, %v659_v23  ;;  %v875_v26 = vpop.f32.mrb[7].mxu1 }
 0x676   :  { %vm733_vm9 = vcmp.gt.f32.partialorder %v730_v25, 0.0  ;;  %v734_v27 = vmul.f32 0.01, %v730_v25 }
 0x678   :  { %v735_v28 = vsel %vm733_vm9, %v730_v25, %v734_v27 }
 0x679   :  { %737 = vst.msk [vmem:[#allocation6] sm:$0x1] %vm736_vm10, %v735_v28 }
 0x67a   :  { %975 = shalt.err (!%p972_p6)
}
 0x67b   :  { %s976_s30 = scalar_lea.hbm %s1252_s14, 16 }
 0x67c   :  { %p977_p7 = scmp.ne.s32.totalorder %s1252_s14, %s976_s30  ;;  %p980_p8 = scmp.lt.u32.totalorder %s976_s30, %s1252_s14 }
 0x67e   :  { %p982_p9 = pnand %p980_p8, %p977_p7 }
 0x680   :  { %985 = shalt.err (!%p982_p9)
}
 0x681   :  { %747 = dma.vmem_to_hbm [thread:$0]  %s745_s28, 16, %s1252_s14, [#allocation5]  }
 0x682   :  { %988 = dma.done.wait [#allocation5], 16  }
 0x683   :  { %989 = vsyncadd [#allocation5], 4294967280 }
 0x684   :  { %990 = dma.done.wait [#allocation8], 16  }
 0x685   :  { %991 = vsyncadd [#allocation8], 4294967280 }
 0x686   :  { %764 = vsyncpa [#allocation4], 1 }
 0x687   :  { %765 = vsyncpa [#allocation5], 1 }
 0x688   :  { %766 = vsyncpa [#allocation8], 1 }

</bundles_post_ra>
